<compile_context>
chip_gen: v6e
topology: v6e:2x2x1
jax: 0.10.0
libtpu: 0.0.40
codegen_flags: <defaults>
</compile_context>

<pallas_src>
import numpy as np
import jax
import jax.numpy as jnp
from jax.experimental import pallas as pl
from jax.experimental.pallas import tpu as pltpu

HIDDEN = 10          # hidden width of the MLP
LANES = 128          # TPU lane count (fast vreg axis)
SUBLANES = 8         # TPU sublane count for f32
ROW_BLOCK = 1024     # max rows per grid step -> (1024,128) f32 tile = 512 KiB
PALLAS_MIN_N = 1024  # below this, plain jnp (XLA-fused) wins on launch overhead


def _make_mlp_kernel(n_pos, n_units):
    """Build the statically-unrolled VPU kernel for a fixed sign split."""

    def mlp_kernel(x_ref, w1_ref, b1_ref, b2_ref, o_ref):
        # x_ref / o_ref : (rb, 128) f32 VMEM tiles; batch is lane-dense.
        # w1_ref / b1_ref : (10,) f32 SMEM (already folded with |w2|).
        # b2_ref          : (1,)  f32 SMEM.
        x = x_ref[...]

        def unit(j):
            # relu(x * (|w2_j|*w1_j) + |w2_j|*b1_j) -> one fma + one max (VPU)
            return jnp.maximum(x * w1_ref[j] + b1_ref[j], 0.0)

        # First unit initializes the accumulator (no zero vreg, no extra add).
        h0 = unit(0)
        acc = h0 if n_pos > 0 else -h0
        for j in range(1, n_units):
            h = unit(j)
            if j < n_pos:          # static Python branch -> fully unrolled
                acc = acc + h
            else:
                acc = acc - h
        o_ref[...] = acc + b2_ref[0]

    return mlp_kernel


def _fold_params(w1, b1, w2):
    """Fold Linear(10,1) into Linear(1,10) on the host (concrete w2 required).

    Returns (w1_folded, b1_folded, n_pos) with units reordered so the first
    n_pos units carry sign(+1) and the rest sign(-1).
    """
    w1_np = np.asarray(w1, dtype=np.float32)
    b1_np = np.asarray(b1, dtype=np.float32)
    w2_np = np.asarray(w2, dtype=np.float32)
    mag = np.abs(w2_np)
    w1f = mag * w1_np
    b1f = mag * b1_np
    pos = w2_np >= 0.0
    order = np.concatenate([np.nonzero(pos)[0], np.nonzero(~pos)[0]])
    n_pos = int(pos.sum())
    return jnp.asarray(w1f[order]), jnp.asarray(b1f[order]), n_pos


def _jnp_forward(x, w1, b1, w2, b2):
    """Pure-JAX reference / small-batch fast path (identical math to Net)."""
    h = jnp.maximum(x * w1[None, :] + b1[None, :], 0.0)
    return h @ w2.reshape(HIDDEN, 1) + b2[0]


def net_forward(x, w1, b1, w2, b2, *, row_block=ROW_BLOCK, use_pallas=None):
    """x: (N, 1) f32.  w1,b1,w2: (10,), b2: (1,).  Returns (N, 1) f32."""
    N = x.shape[0]
    if use_pallas is None:
        use_pallas = N >= PALLAS_MIN_N
    if not use_pallas:
        return _jnp_forward(x, w1, b1, w2, b2)

    w1f, b1f, n_pos = _fold_params(w1, b1, w2)
    b2f = jnp.asarray(b2, dtype=jnp.float32).reshape(1)

    # Lane-dense relayout: flatten the (N,1) batch and view it as (rows, 128).
    xf = x.reshape(-1).astype(jnp.float32)
    rows = pl.cdiv(N, LANES)
    padded = rows * LANES
    if padded == N:
        xp = xf.reshape(rows, LANES)            # pure reshape, no pad copy
    else:
        xp = jnp.pad(xf, (0, padded - N)).reshape(rows, LANES)

    if rows >= 2 * SUBLANES:
        # >=2 grid steps when rows permit (v7x megacore), block rows a multiple
        # of 8, capped at row_block.  A ragged last block is handled by Pallas
        # partial-block masking (OOB output rows are dropped), no row padding.
        rb = min(row_block, pl.cdiv(pl.cdiv(rows, 2), SUBLANES) * SUBLANES)
    else:
        rb = rows                                # single whole-array block
    grid = (pl.cdiv(rows, rb),)

    vmem_spec = pl.BlockSpec((rb, LANES), lambda i: (i, 0))
    smem_spec = pl.BlockSpec(memory_space=pltpu.MemorySpace.SMEM)

    out = pl.pallas_call(
        _make_mlp_kernel(n_pos, HIDDEN),
        out_shape=jax.ShapeDtypeStruct((rows, LANES), jnp.float32),
        grid=grid,
        in_specs=[vmem_spec, smem_spec, smem_spec, smem_spec],
        out_specs=vmem_spec,
        compiler_params=pltpu.CompilerParams(
            dimension_semantics=("parallel",)),
    )(xp, w1f, b1f, b2f)

    if padded == N:
        return out.reshape(N, 1)                 # free reshape, no slice copy
    return out.reshape(-1)[:N].reshape(N, 1)


def init_params(key):
    """Deterministic init matching PyTorch Linear fan-in bounds.

    Linear(1, 10): weight (10,1) -> flattened (10,), bias (10,), bound 1/sqrt(1)
    Linear(10, 1): weight (1,10) -> flattened (10,), bias (1,),  bound 1/sqrt(10)
    """
    k1, k2, k3, k4 = jax.random.split(key, 4)
    bound1 = 1.0 / np.sqrt(1.0)
    bound2 = 1.0 / np.sqrt(10.0)
    w1 = jax.random.uniform(k1, (HIDDEN,), jnp.float32, -bound1, bound1)
    b1 = jax.random.uniform(k2, (HIDDEN,), jnp.float32, -bound1, bound1)
    w2 = jax.random.uniform(k3, (HIDDEN,), jnp.float32, -bound2, bound2)
    b2 = jax.random.uniform(k4, (1,), jnp.float32, -bound2, bound2)
    return w1, b1, w2, b2


if __name__ == "__main__":
    key = jax.random.PRNGKey(0)
    kp, kx = jax.random.split(key)
    w1, b1, w2, b2 = init_params(kp)

    # Same input as the reference script: 100 points in [-pi, pi], shape (100,1)
    x_small = jnp.linspace(-jnp.pi, jnp.pi, 100, dtype=jnp.float32).reshape(100, 1)
    # Force the Pallas path once to validate the kernel at the benchmark size.
    out_small = jax.block_until_ready(
        net_forward(x_small, w1, b1, w2, b2, use_pallas=True))
    ref_small = _jnp_forward(x_small, w1, b1, w2, b2)
    assert out_small.shape == (100, 1)
    np.testing.assert_allclose(np.asarray(out_small), np.asarray(ref_small),
                               rtol=1e-5, atol=1e-5)

    # Larger lane-dense batch: exercises the multi-block, zero-pad-free path
    # (N % 128 == 0) and the >=2-step "parallel" grid.
    x_big = jax.random.uniform(kx, (2048, 1), jnp.float32,
                               minval=-jnp.pi, maxval=jnp.pi)
    out_big = jax.block_until_ready(net_forward(x_big, w1, b1, w2, b2))
    ref_big = _jnp_forward(x_big, w1, b1, w2, b2)
    np.testing.assert_allclose(np.asarray(out_big), np.asarray(ref_big),
                               rtol=1e-5, atol=1e-5)

    print("KERNEL_OK")
</pallas_src>

<mosaic_0001>
module attributes {stable_mosaic.version = 11 : i64} {
  func.func @mlp_kernel(%arg0: i32, %arg1: memref<1x128xf32, #tpu.memory_space<vmem>>, %arg2: memref<10xf32, #tpu.memory_space<smem>>, %arg3: memref<10xf32, #tpu.memory_space<smem>>, %arg4: memref<1xf32, #tpu.memory_space<smem>>, %arg5: memref<1x128xf32, #tpu.memory_space<vmem>>) attributes {dimension_semantics = [#tpu.dimension_semantics<parallel>], iteration_bounds = array<i64: 1>, scalar_prefetch = 0 : i64, scratch_operands = 0 : i64, tpu.core_type = #tpu.core_type<tc>, window_params = [{transform_indices = @transform_0, window_bounds = array<i64: 1, 128>}, {transform_indices = @transform_1, window_bounds = array<i64: 10>}, {transform_indices = @transform_2, window_bounds = array<i64: 10>}, {transform_indices = @transform_3, window_bounds = array<i64: 1>}, {transform_indices = @transform_4, window_bounds = array<i64: 1, 128>}]} {
    %c0 = arith.constant 0 : index
    %c0_0 = arith.constant 0 : index
    %0 = vector.load %arg1[%c0, %c0_0] : memref<1x128xf32, #tpu.memory_space<vmem>>, vector<1x128xf32>
    %c0_1 = arith.constant 0 : index
    %1 = memref.load %arg2[%c0_1] : memref<10xf32, #tpu.memory_space<smem>>
    %2 = vector.broadcast %1 : f32 to vector<1x128xf32>
    %3 = arith.mulf %0, %2 : vector<1x128xf32>
    %c0_2 = arith.constant 0 : index
    %4 = memref.load %arg3[%c0_2] : memref<10xf32, #tpu.memory_space<smem>>
    %5 = vector.broadcast %4 : f32 to vector<1x128xf32>
    %6 = arith.addf %3, %5 : vector<1x128xf32>
    %cst = arith.constant 0.000000e+00 : f32
    %7 = vector.broadcast %cst : f32 to vector<1x128xf32>
    %8 = arith.maximumf %6, %7 : vector<1x128xf32>
    %c1 = arith.constant 1 : index
    %9 = memref.load %arg2[%c1] : memref<10xf32, #tpu.memory_space<smem>>
    %10 = vector.broadcast %9 : f32 to vector<1x128xf32>
    %11 = arith.mulf %0, %10 : vector<1x128xf32>
    %c1_3 = arith.constant 1 : index
    %12 = memref.load %arg3[%c1_3] : memref<10xf32, #tpu.memory_space<smem>>
    %13 = vector.broadcast %12 : f32 to vector<1x128xf32>
    %14 = arith.addf %11, %13 : vector<1x128xf32>
    %cst_4 = arith.constant 0.000000e+00 : f32
    %15 = vector.broadcast %cst_4 : f32 to vector<1x128xf32>
    %16 = arith.maximumf %14, %15 : vector<1x128xf32>
    %17 = arith.addf %8, %16 : vector<1x128xf32>
    %c2 = arith.constant 2 : index
    %18 = memref.load %arg2[%c2] : memref<10xf32, #tpu.memory_space<smem>>
    %19 = vector.broadcast %18 : f32 to vector<1x128xf32>
    %20 = arith.mulf %0, %19 : vector<1x128xf32>
    %c2_5 = arith.constant 2 : index
    %21 = memref.load %arg3[%c2_5] : memref<10xf32, #tpu.memory_space<smem>>
    %22 = vector.broadcast %21 : f32 to vector<1x128xf32>
    %23 = arith.addf %20, %22 : vector<1x128xf32>
    %cst_6 = arith.constant 0.000000e+00 : f32
    %24 = vector.broadcast %cst_6 : f32 to vector<1x128xf32>
    %25 = arith.maximumf %23, %24 : vector<1x128xf32>
    %26 = arith.addf %17, %25 : vector<1x128xf32>
    %c3 = arith.constant 3 : index
    %27 = memref.load %arg2[%c3] : memref<10xf32, #tpu.memory_space<smem>>
    %28 = vector.broadcast %27 : f32 to vector<1x128xf32>
    %29 = arith.mulf %0, %28 : vector<1x128xf32>
    %c3_7 = arith.constant 3 : index
    %30 = memref.load %arg3[%c3_7] : memref<10xf32, #tpu.memory_space<smem>>
    %31 = vector.broadcast %30 : f32 to vector<1x128xf32>
    %32 = arith.addf %29, %31 : vector<1x128xf32>
    %cst_8 = arith.constant 0.000000e+00 : f32
    %33 = vector.broadcast %cst_8 : f32 to vector<1x128xf32>
    %34 = arith.maximumf %32, %33 : vector<1x128xf32>
    %35 = arith.addf %26, %34 : vector<1x128xf32>
    %c4 = arith.constant 4 : index
    %36 = memref.load %arg2[%c4] : memref<10xf32, #tpu.memory_space<smem>>
    %37 = vector.broadcast %36 : f32 to vector<1x128xf32>
    %38 = arith.mulf %0, %37 : vector<1x128xf32>
    %c4_9 = arith.constant 4 : index
    %39 = memref.load %arg3[%c4_9] : memref<10xf32, #tpu.memory_space<smem>>
    %40 = vector.broadcast %39 : f32 to vector<1x128xf32>
    %41 = arith.addf %38, %40 : vector<1x128xf32>
    %cst_10 = arith.constant 0.000000e+00 : f32
    %42 = vector.broadcast %cst_10 : f32 to vector<1x128xf32>
    %43 = arith.maximumf %41, %42 : vector<1x128xf32>
    %44 = arith.addf %35, %43 : vector<1x128xf32>
    %c5 = arith.constant 5 : index
    %45 = memref.load %arg2[%c5] : memref<10xf32, #tpu.memory_space<smem>>
    %46 = vector.broadcast %45 : f32 to vector<1x128xf32>
    %47 = arith.mulf %0, %46 : vector<1x128xf32>
    %c5_11 = arith.constant 5 : index
    %48 = memref.load %arg3[%c5_11] : memref<10xf32, #tpu.memory_space<smem>>
    %49 = vector.broadcast %48 : f32 to vector<1x128xf32>
    %50 = arith.addf %47, %49 : vector<1x128xf32>
    %cst_12 = arith.constant 0.000000e+00 : f32
    %51 = vector.broadcast %cst_12 : f32 to vector<1x128xf32>
    %52 = arith.maximumf %50, %51 : vector<1x128xf32>
    %53 = arith.addf %44, %52 : vector<1x128xf32>
    %c6 = arith.constant 6 : index
    %54 = memref.load %arg2[%c6] : memref<10xf32, #tpu.memory_space<smem>>
    %55 = vector.broadcast %54 : f32 to vector<1x128xf32>
    %56 = arith.mulf %0, %55 : vector<1x128xf32>
    %c6_13 = arith.constant 6 : index
    %57 = memref.load %arg3[%c6_13] : memref<10xf32, #tpu.memory_space<smem>>
    %58 = vector.broadcast %57 : f32 to vector<1x128xf32>
    %59 = arith.addf %56, %58 : vector<1x128xf32>
    %cst_14 = arith.constant 0.000000e+00 : f32
    %60 = vector.broadcast %cst_14 : f32 to vector<1x128xf32>
    %61 = arith.maximumf %59, %60 : vector<1x128xf32>
    %62 = arith.subf %53, %61 : vector<1x128xf32>
    %c7 = arith.constant 7 : index
    %63 = memref.load %arg2[%c7] : memref<10xf32, #tpu.memory_space<smem>>
    %64 = vector.broadcast %63 : f32 to vector<1x128xf32>
    %65 = arith.mulf %0, %64 : vector<1x128xf32>
    %c7_15 = arith.constant 7 : index
    %66 = memref.load %arg3[%c7_15] : memref<10xf32, #tpu.memory_space<smem>>
    %67 = vector.broadcast %66 : f32 to vector<1x128xf32>
    %68 = arith.addf %65, %67 : vector<1x128xf32>
    %cst_16 = arith.constant 0.000000e+00 : f32
    %69 = vector.broadcast %cst_16 : f32 to vector<1x128xf32>
    %70 = arith.maximumf %68, %69 : vector<1x128xf32>
    %71 = arith.subf %62, %70 : vector<1x128xf32>
    %c8 = arith.constant 8 : index
    %72 = memref.load %arg2[%c8] : memref<10xf32, #tpu.memory_space<smem>>
    %73 = vector.broadcast %72 : f32 to vector<1x128xf32>
    %74 = arith.mulf %0, %73 : vector<1x128xf32>
    %c8_17 = arith.constant 8 : index
    %75 = memref.load %arg3[%c8_17] : memref<10xf32, #tpu.memory_space<smem>>
    %76 = vector.broadcast %75 : f32 to vector<1x128xf32>
    %77 = arith.addf %74, %76 : vector<1x128xf32>
    %cst_18 = arith.constant 0.000000e+00 : f32
    %78 = vector.broadcast %cst_18 : f32 to vector<1x128xf32>
    %79 = arith.maximumf %77, %78 : vector<1x128xf32>
    %80 = arith.subf %71, %79 : vector<1x128xf32>
    %c9 = arith.constant 9 : index
    %81 = memref.load %arg2[%c9] : memref<10xf32, #tpu.memory_space<smem>>
    %82 = vector.broadcast %81 : f32 to vector<1x128xf32>
    %83 = arith.mulf %0, %82 : vector<1x128xf32>
    %c9_19 = arith.constant 9 : index
    %84 = memref.load %arg3[%c9_19] : memref<10xf32, #tpu.memory_space<smem>>
    %85 = vector.broadcast %84 : f32 to vector<1x128xf32>
    %86 = arith.addf %83, %85 : vector<1x128xf32>
    %cst_20 = arith.constant 0.000000e+00 : f32
    %87 = vector.broadcast %cst_20 : f32 to vector<1x128xf32>
    %88 = arith.maximumf %86, %87 : vector<1x128xf32>
    %89 = arith.subf %80, %88 : vector<1x128xf32>
    %c0_21 = arith.constant 0 : index
    %90 = memref.load %arg4[%c0_21] : memref<1xf32, #tpu.memory_space<smem>>
    %91 = vector.broadcast %90 : f32 to vector<1x128xf32>
    %92 = arith.addf %89, %91 : vector<1x128xf32>
    %c0_22 = arith.constant 0 : index
    %c0_23 = arith.constant 0 : index
    %93 = vector.load %arg5[%c0_22, %c0_23] : memref<1x128xf32, #tpu.memory_space<vmem>>, vector<1x128xf32>
    tpu.vector_store %arg5[%c0_22, %c0_23], %92 {strides = array<i32>} : memref<1x128xf32, #tpu.memory_space<vmem>>, vector<1x128xf32>,
    return
  }
  func.func @transform_0(%arg0: i32) -> (i32, i32) {
    %c0_i32 = arith.constant 0 : i32
    %c0_i32_0 = arith.constant 0 : i32
    return %arg0, %c0_i32 : i32, i32
  }
  func.func @transform_1(%arg0: i32) -> i32 {
    %c0_i32 = arith.constant 0 : i32
    %c0_i32_0 = arith.constant 0 : i32
    return %c0_i32 : i32
  }
  func.func @transform_2(%arg0: i32) -> i32 {
    %c0_i32 = arith.constant 0 : i32
    %c0_i32_0 = arith.constant 0 : i32
    return %c0_i32 : i32
  }
  func.func @transform_3(%arg0: i32) -> i32 {
    %c0_i32 = arith.constant 0 : i32
    %c0_i32_0 = arith.constant 0 : i32
    return %c0_i32 : i32
  }
  func.func @transform_4(%arg0: i32) -> (i32, i32) {
    %c0_i32 = arith.constant 0 : i32
    %c0_i32_0 = arith.constant 0 : i32
    return %arg0, %c0_i32 : i32, i32
  }
}

</mosaic_0001>

<bundles_post_ra>
// kernel: tpu_custom_call.1
= control target key start
LH: loop header
LB: loop body
LE: loop exit
PB: predicated region body
PF: predicated region fallthrough
CT: control target
= control target key end

     0   :  { %10 = vsyncpa [#allocation5], 0  ;;  %s270_s0 = inlined_call_operand.vmem [shape: f32[1,128], index: 0, kind: input, shape index: {}]   ;;  %s271_s1 = inlined_call_operand.vmem [shape: f32[10], index: 1, kind: input, shape index: {}]   ;;  %s272_s2 = inlined_call_operand.vmem [shape: f32[10], index: 2, kind: input, shape index: {}]   ;;  %s273_s3 = inlined_call_operand.<no memory space> [shape: f32[1], index: 3, kind: input, shape index: {}]   ;;  %s274_s4 = inlined_call_operand.hbm [shape: f32[1,128], index: 4, kind: output, shape index: {}]  }
   0x1   :  { %11 = vsyncpa [#allocation7], 0 }
   0x2   :  { %12 = vsyncpa [#allocation4], 0  ;;  %s21_s17 = sshll.u32 %s271_s1, 4  ;;  %s31_s20 = sshll.u32 %s272_s2, 4  ;;  %s22_s17 = int_to_ptr.vmem [resolvable:$true] %s21_s17  ;;  %s32_s20 = int_to_ptr.vmem [resolvable:$true] %s31_s20 }
   0x3   :  { %s165_s21 = scalar_lea.vmem %s22_s17, 16  ;;  %p170_p1 = scmp.lt.s32.totalorder %s22_s17, %s22_s17 }
   0x4   :  { %p166_p0 = scmp.ne.s32.totalorder %s22_s17, %s165_s21  ;;  %p171_p2 = scmp.lt.s32.totalorder %s165_s21, %s165_s21 }
   0x6   :  { %p172_p3 = por %p171_p2, %p170_p1 }
   0x8   :  { %p173_p4 = pnand %p172_p3, %p166_p0 }
   0xa   :  { %176 = shalt.err (!%p173_p4)
}
   0xb   :  { %s215_s22 = smov [#allocation3]   ;;  %s177_s23 = scalar_lea.vmem %s32_s20, 16 }
   0xc   :  { %24 = dma.vmem_to_smem %s22_s17, 16, %s215_s22, [#allocation5]  }
   0xd   :  { %p178_p5 = scmp.ne.s32.totalorder %s32_s20, %s177_s23  ;;  %p182_p6 = scmp.lt.s32.totalorder %s32_s20, %s32_s20 }
   0xe   :  { %p183_p7 = scmp.lt.s32.totalorder %s177_s23, %s177_s23 }
  0x10   :  { %p184_p8 = por %p183_p7, %p182_p6 }
  0x12   :  { %p185_p9 = pnand %p184_p8, %p178_p5 }
  0x14   :  { %188 = shalt.err (!%p185_p9)
}
  0x15   :  { %s216_s1 = smov [#allocation6]  }
  0x16   :  { %34 = dma.vmem_to_smem %s32_s20, 16, %s216_s1, [#allocation7]  }
  0x17   :  { %209 = dma.done.wait [#allocation5], 16  }
  0x18   :  { %210 = vsyncadd [#allocation5], 4294967280 }
  0x19   :  { %211 = dma.done.wait [#allocation7], 16  }
  0x1a   :  { %212 = vsyncadd [#allocation7], 4294967280 }
  0x1b   :  { %43 = sfence }
  0x1c   :  { %s45_s2 = sld [smem:[#allocation3]]  ;;  %v252_v0 = vld [vmem:[%s270_s0] sm:$0x1]  ;;  %v125_v59 = vstv %s273_s3  ;;  %s217_s20 = smov [#allocation8]  }
  0x1d   :  { %s48_s24 = sld [smem:[#allocation6]]  ;;  %s134_s21 = sshll.u32 %s217_s20, 4  ;;  %s135_s21 = int_to_ptr.vmem [resolvable:$true] %s134_s21 }
  0x1e   :  { %s144_s25 = sld [smem:[#allocation3 + $0x1]]  ;;  %s189_s22 = scalar_lea.vmem %s135_s21, 16 }
  0x1f   :  { %s145_s26 = sld [smem:[#allocation6 + $0x1]]  ;;  %p190_p10 = scmp.ne.s32.totalorder %s135_s21, %s189_s22 }
  0x20   :  { %s146_s29 = sld [smem:[#allocation3 + $0x2]]  ;;  %s193_s23 = scalar_lea.vmem %s135_s21, 32 }
  0x21   :  { %s147_s30 = sld [smem:[#allocation6 + $0x2]]  ;;  %p194_p11 = scmp.lt.s32.totalorder %s135_s21, %s135_s21 }
  0x22   :  { %v46_v1 = vstv %s45_s2  ;;  %s148_s5 = sld [smem:[#allocation3 + $0x3]]  ;;  %p195_p12 = scmp.lt.s32.totalorder %s193_s23, %s189_s22 }
  0x23   :  { %v47_v2 = vmul.f32 %v46_v1, %v252_v0  ;;  %v49_v3 = vstv %s48_s24  ;;  %s149_s6 = sld [smem:[#allocation6 + $0x3]] }
  0x24   :  { %v53_v4 = vstv %s144_s25  ;;  %s150_s7 = sld [smem:[#allocation3 + $0x4]]  ;;  %p196_p13 = por %p195_p12, %p194_p11 }
  0x25   :  { %v50_v5 = vadd.f32 %v49_v3, %v47_v2  ;;  %v54_v6 = vmul.f32 %v53_v4, %v252_v0  ;;  %v56_v7 = vstv %s145_s26  ;;  %s151_s8 = sld [smem:[#allocation6 + $0x4]] }
  0x26   :  { %v61_v8 = vstv %s146_s29  ;;  %s152_s9 = sld [smem:[#allocation3 + $0x5]]  ;;  %p197_p0 = pnand %p196_p13, %p190_p10 }
  0x27   :  { %v51_v9 = vmax.f32 %v50_v5, 0.0  ;;  %v57_v10 = vadd.f32 %v56_v7, %v54_v6  ;;  %v62_v11 = vmul.f32 %v61_v8, %v252_v0  ;;  %v64_v12 = vstv %s147_s30  ;;  %s153_s0 = sld [smem:[#allocation6 + $0x5]] }
  0x28   :  { %v69_v13 = vstv %s148_s5  ;;  %s154_s10 = sld [smem:[#allocation3 + $0x6]] }
  0x29   :  { %v58_v14 = vmax.f32 %v57_v10, 0.0  ;;  %v65_v15 = vadd.f32 %v64_v12, %v62_v11  ;;  %v70_v16 = vmul.f32 %v69_v13, %v252_v0  ;;  %v72_v17 = vstv %s149_s6  ;;  %s155_s11 = sld [smem:[#allocation6 + $0x6]] }
  0x2a   :  { %v77_v18 = vstv %s150_s7  ;;  %s156_s12 = sld [smem:[#allocation3 + $0x7]] }
  0x2b   :  { %v59_v19 = vadd.f32 %v58_v14, %v51_v9  ;;  %v66_v20 = vmax.f32 %v65_v15, 0.0  ;;  %v73_v21 = vadd.f32 %v72_v17, %v70_v16  ;;  %v78_v22 = vmul.f32 %v77_v18, %v252_v0  ;;  %s157_s13 = sld [smem:[#allocation6 + $0x7]] }
  0x2c   :  { %v80_v23 = vstv %s151_s8  ;;  %v85_v24 = vstv %s152_s9  ;;  %s158_s14 = sld [smem:[#allocation3 + $0x8]] }
  0x2d   :  { %v67_v25 = vadd.f32 %v66_v20, %v59_v19  ;;  %v74_v26 = vmax.f32 %v73_v21, 0.0  ;;  %v81_v27 = vadd.f32 %v80_v23, %v78_v22  ;;  %v86_v28 = vmul.f32 %v85_v24, %v252_v0  ;;  %s159_s15 = sld [smem:[#allocation6 + $0x8]] }
  0x2e   :  { %v88_v29 = vstv %s153_s0  ;;  %v93_v30 = vstv %s154_s10  ;;  %s160_s16 = sld [smem:[#allocation3 + $0x9]] }
  0x2f   :  { %v75_v31 = vadd.f32 %v74_v26, %v67_v25  ;;  %v82_v32 = vmax.f32 %v81_v27, 0.0  ;;  %v89_v33 = vadd.f32 %v88_v29, %v86_v28  ;;  %v94_v34 = vmul.f32 %v93_v30, %v252_v0  ;;  %s161_s17 = sld [smem:[#allocation6 + $0x9]] }
  0x30   :  { %v96_v35 = vstv %s155_s11  ;;  %v101_v36 = vstv %s156_s12 }
  0x31   :  { %v83_v37 = vadd.f32 %v82_v32, %v75_v31  ;;  %v90_v38 = vmax.f32 %v89_v33, 0.0  ;;  %v97_v39 = vadd.f32 %v96_v35, %v94_v34  ;;  %v102_v40 = vmul.f32 %v101_v36, %v252_v0 }
  0x32   :  { %v104_v41 = vstv %s157_s13  ;;  %v109_v42 = vstv %s158_s14 }
  0x33   :  { %v91_v43 = vadd.f32 %v90_v38, %v83_v37  ;;  %v98_v44 = vmax.f32 %v97_v39, 0.0  ;;  %v105_v45 = vadd.f32 %v104_v41, %v102_v40  ;;  %v110_v46 = vmul.f32 %v109_v42, %v252_v0 }
  0x34   :  { %v112_v47 = vstv %s159_s15  ;;  %v117_v48 = vstv %s160_s16 }
  0x35   :  { %v99_v49 = vsub.f32 %v91_v43, %v98_v44  ;;  %v106_v50 = vmax.f32 %v105_v45, 0.0  ;;  %v113_v51 = vadd.f32 %v112_v47, %v110_v46  ;;  %v118_v52 = vmul.f32 %v117_v48, %v252_v0 }
  0x36   :  { %v120_v53 = vstv %s161_s17 }
  0x37   :  { %v107_v54 = vsub.f32 %v99_v49, %v106_v50  ;;  %v114_v55 = vmax.f32 %v113_v51, 0.0  ;;  %v121_v56 = vadd.f32 %v120_v53, %v118_v52 }
  0x39   :  { %v115_v57 = vsub.f32 %v107_v54, %v114_v55  ;;  %v122_v58 = vmax.f32 %v121_v56, 0.0 }
  0x3b   :  { %v123_v60 = vsub.f32 %v115_v57, %v122_v58 }
  0x3d   :  { %v126_v61 = vadd.f32 %v125_v59, %v123_v60 }
  0x3f   :  { %127 = vst [vmem:[#allocation8] sm:$0x1] %v126_v61 }
  0x40   :  { %200 = shalt.err (!%p197_p0)
}
  0x41   :  { %137 = dma.vmem_to_hbm [thread:$0]  %s135_s21, 16, %s274_s4, [#allocation4]  }
  0x42   :  { %213 = dma.done.wait [#allocation4], 16  }
  0x43   :  { %214 = vsyncadd [#allocation4], 4294967280 }
  0x44   :  { %141 = vsyncpa [#allocation4], 1 }
  0x45   :  { %142 = vsyncpa [#allocation5], 1 }
  0x46   :  { %143 = vsyncpa [#allocation7], 1 }

</bundles_post_ra>
